<compile_context>
chip_gen: v6e
topology: v6e:2x2x1
jax: 0.10.0
libtpu: 0.0.40
codegen_flags: <defaults>
</compile_context>

<pallas_src>
import jax
import jax.numpy as jnp
from jax.experimental import pallas as pl
from jax.experimental.pallas import tpu as pltpu


def _conv1x1_bn_relu_kernel(w_ref, b_ref, x_ref, o_ref):
    # w_ref: (Cout, Cin)  conv weight with BN scale (gamma / sqrt(var + eps)) folded in
    # b_ref: (Cout, 1)    folded BN bias (beta - mean * scale)
    # x_ref: (Cin, TS)    channels x spatial tile of one batch element (lane-dense)
    # o_ref: (Cout, TS)
    y = jnp.dot(w_ref[...], x_ref[...], preferred_element_type=jnp.float32)
    y = y + b_ref[...]
    o_ref[...] = jnp.maximum(y, 0.0).astype(o_ref.dtype)


def _pick_spatial_tile(hw, cin, cout, budget_bytes=32 * 1024 * 1024):
    """Largest lane-dense spatial tile whose double-buffered tiles fit the VMEM budget."""
    if hw <= 128:
        return hw                              # full dim (legal even if < 128)
    elem = 4                                   # f32
    fixed = 2 * (cin * cout + cout) * elem     # double-buffered weight + bias
    per_col = 2 * (cin + cout) * elem          # double-buffered x + out, per spatial column
    max_cols = max(128, (budget_bytes - fixed) // per_col)
    ts = min(hw, 2048, (max_cols // 128) * 128)
    return max(ts, 128)


@jax.jit
def conv1x1_bn_relu(x_nchw, weight, gamma, beta, running_mean, running_var, eps=1e-5):
    """x_nchw: (N, Cin, H, W); weight: (Cout, Cin) (squeezed from torch (Cout, Cin, 1, 1))."""
    n, cin, h, w = x_nchw.shape
    cout = weight.shape[0]
    hw = h * w

    # Fold BN (inference) into the conv:  relu((W x) * s + b) == relu((W*s) x + b).
    scale = gamma / jnp.sqrt(running_var + eps)                       # (Cout,)
    w_folded = weight.astype(jnp.float32) * scale[:, None]            # (Cout, Cin)
    bias = (beta - running_mean * scale).astype(jnp.float32).reshape(cout, 1)

    # NCHW -> (N, Cin, H*W): free reshape, no transpose / extra HBM pass.
    x3 = x_nchw.reshape(n, cin, hw)

    ts = _pick_spatial_tile(hw, cin, cout)
    grid = (n, pl.cdiv(hw, ts))

    # VMEM: double-buffered x/out tiles + resident (double-buffered) weight/bias + headroom.
    need = (2 * ts * (cin + cout) + 2 * (cin * cout + cout)) * 4
    vmem_limit = int(min(48 * 1024 * 1024, max(32 * 1024 * 1024, need + (4 << 20))))

    out3 = pl.pallas_call(
        _conv1x1_bn_relu_kernel,
        out_shape=jax.ShapeDtypeStruct((n, cout, hw), x_nchw.dtype),
        grid_spec=pltpu.PrefetchScalarGridSpec(
            num_scalar_prefetch=0,
            grid=grid,
            in_specs=[
                pl.BlockSpec((cout, cin), lambda b, j: (0, 0)),        # weight (constant block)
                pl.BlockSpec((cout, 1), lambda b, j: (0, 0)),          # bias   (constant block)
                pl.BlockSpec((None, cin, ts), lambda b, j: (b, 0, j)),  # x tile (batch squeezed)
            ],
            out_specs=pl.BlockSpec((None, cout, ts), lambda b, j: (b, 0, j)),
        ),
        compiler_params=pltpu.CompilerParams(
            dimension_semantics=("parallel", "parallel"),
            vmem_limit_bytes=vmem_limit,
        ),
    )(w_folded, bias, x3)

    # (N, Cout, H*W) -> NCHW: free reshape.
    return out3.reshape(n, cout, h, w)


if __name__ == "__main__":
    key = jax.random.PRNGKey(0)
    k_x, k_w, k_g, k_b, k_m, k_v = jax.random.split(key, 6)

    N, Cin, H, W = 2, 4, 16, 16
    Cout = 8

    x = jax.random.normal(k_x, (N, Cin, H, W), dtype=jnp.float32)
    weight = jax.random.normal(k_w, (Cout, Cin), dtype=jnp.float32) * 0.1
    gamma = jax.random.normal(k_g, (Cout,), dtype=jnp.float32) * 0.1 + 1.0
    beta = jax.random.normal(k_b, (Cout,), dtype=jnp.float32) * 0.1
    running_mean = jax.random.normal(k_m, (Cout,), dtype=jnp.float32) * 0.1
    running_var = jnp.abs(jax.random.normal(k_v, (Cout,), dtype=jnp.float32)) * 0.1 + 1.0

    out = conv1x1_bn_relu(x, weight, gamma, beta, running_mean, running_var)
    out = jax.block_until_ready(out)

    # Pure-JAX reference check (1x1 conv == einsum over channel dim, then BN + ReLU).
    ref = jnp.einsum("nchw,oc->nohw", x, weight)
    r_scale = gamma / jnp.sqrt(running_var + 1e-5)
    r_bias = beta - running_mean * r_scale
    ref = ref * r_scale[None, :, None, None] + r_bias[None, :, None, None]
    ref = jnp.maximum(ref, 0.0)
    assert out.shape == (N, Cout, H, W)
    assert jnp.allclose(out, ref, atol=1e-5, rtol=1e-5)

    print("KERNEL_OK")
</pallas_src>

<mosaic_0001>
module attributes {stable_mosaic.version = 11 : i64} {
  func.func @_conv1x1_bn_relu_kernel(%arg0: i32, %arg1: i32, %arg2: memref<8x4xf32, #tpu.memory_space<vmem>>, %arg3: memref<8x1xf32, #tpu.memory_space<vmem>>, %arg4: memref<1x4x256xf32, #tpu.memory_space<vmem>>, %arg5: memref<1x8x256xf32, #tpu.memory_space<vmem>>) attributes {dimension_semantics = [#tpu.dimension_semantics<parallel>, #tpu.dimension_semantics<parallel>], iteration_bounds = array<i64: 2, 1>, scalar_prefetch = 0 : i64, scratch_operands = 0 : i64, tpu.core_type = #tpu.core_type<tc>, window_params = [{pipeline_mode = #tpu.pipeline_mode<synchronous>, transform_indices = @transform_0, window_bounds = array<i64: 8, 4>}, {pipeline_mode = #tpu.pipeline_mode<synchronous>, transform_indices = @transform_1, window_bounds = array<i64: 8, 1>}, {transform_indices = @transform_2, window_bounds = array<i64: 1, 4, 256>}, {transform_indices = @transform_3, window_bounds = array<i64: 1, 8, 256>}]} {
    %c0 = arith.constant 0 : index
    %c0_0 = arith.constant 0 : index
    %0 = vector.load %arg2[%c0, %c0_0] : memref<8x4xf32, #tpu.memory_space<vmem>>, vector<8x4xf32>
    %c0_1 = arith.constant 0 : index
    %c0_2 = arith.constant 0 : index
    %c0_3 = arith.constant 0 : index
    %1 = vector.load %arg4[%c0_1, %c0_2, %c0_3] : memref<1x4x256xf32, #tpu.memory_space<vmem>>, vector<1x4x256xf32>
    %2 = vector.shape_cast %1 : vector<1x4x256xf32> to vector<4x256xf32>
    %cst = arith.constant dense<0.000000e+00> : vector<8x256xf32>
    %3 = tpu.matmul %0, %2, %cst {dimension_numbers = #tpu.dot_dimension_numbers<[1], [0], [0], [1], [0, 0, 1, 1], [], []>} : vector<8x4xf32>, vector<4x256xf32>, vector<8x256xf32> -> vector<8x256xf32>
    %c0_4 = arith.constant 0 : index
    %c0_5 = arith.constant 0 : index
    %4 = vector.load %arg3[%c0_4, %c0_5] : memref<8x1xf32, #tpu.memory_space<vmem>>, vector<8x1xf32>
    %5 = vector.broadcast %4 : vector<8x1xf32> to vector<8x256xf32>
    %6 = arith.addf %3, %5 : vector<8x256xf32>
    %cst_6 = arith.constant 0.000000e+00 : f32
    %7 = vector.broadcast %cst_6 : f32 to vector<8x256xf32>
    %8 = arith.maximumf %6, %7 : vector<8x256xf32>
    %c0_7 = arith.constant 0 : index
    %c0_8 = arith.constant 0 : index
    %c0_9 = arith.constant 0 : index
    %9 = vector.load %arg5[%c0_7, %c0_8, %c0_9] : memref<1x8x256xf32, #tpu.memory_space<vmem>>, vector<1x8x256xf32>
    %10 = vector.shape_cast %9 : vector<1x8x256xf32> to vector<8x256xf32>
    %11 = vector.shape_cast %8 : vector<8x256xf32> to vector<1x8x256xf32>
    tpu.vector_store %arg5[%c0_7, %c0_8, %c0_9], %11 {strides = array<i32>} : memref<1x8x256xf32, #tpu.memory_space<vmem>>, vector<1x8x256xf32>,
    return
  }
  func.func @transform_0(%arg0: i32, %arg1: i32) -> (i32, i32) {
    %c0_i32 = arith.constant 0 : i32
    %c0_i32_0 = arith.constant 0 : i32
    %c0_i32_1 = arith.constant 0 : i32
    return %c0_i32, %c0_i32_0 : i32, i32
  }
  func.func @transform_1(%arg0: i32, %arg1: i32) -> (i32, i32) {
    %c0_i32 = arith.constant 0 : i32
    %c0_i32_0 = arith.constant 0 : i32
    %c0_i32_1 = arith.constant 0 : i32
    return %c0_i32, %c0_i32_0 : i32, i32
  }
  func.func @transform_2(%arg0: i32, %arg1: i32) -> (i32, i32, i32) {
    %c0_i32 = arith.constant 0 : i32
    %c0_i32_0 = arith.constant 0 : i32
    return %arg0, %c0_i32, %arg1 : i32, i32, i32
  }
  func.func @transform_3(%arg0: i32, %arg1: i32) -> (i32, i32, i32) {
    %c0_i32 = arith.constant 0 : i32
    %c0_i32_0 = arith.constant 0 : i32
    return %arg0, %c0_i32, %arg1 : i32, i32, i32
  }
}

</mosaic_0001>

<bundles_post_ra>
// kernel: conv1x1_bn_relu.1
= control target key start
LH: loop header
LB: loop body
LE: loop exit
PB: predicated region body
PF: predicated region fallthrough
CT: control target
= control target key end

     0   :  { %s481_s12 = smov 0   ;;  %s483_s13 = smov 0   ;;  %s520_s0 = inlined_call_operand.vmem [shape: f32[8,4], index: 0, kind: input, shape index: {}]   ;;  %s521_s1 = inlined_call_operand.vmem [shape: f32[8,1], index: 1, kind: input, shape index: {}]   ;;  %s522_s2 = inlined_call_operand.vmem [shape: f32[2,4,256], index: 2, kind: input, shape index: {}]   ;;  %s523_s3 = inlined_call_operand.vmem [shape: f32[2,8,256], index: 3, kind: output, shape index: {}]  }
   0x1   :  { %s485_s14 = smov 0  }
   0x2 LB: > { %s25_s15 = sadd.s32 1, %s453_s13  ;;  %p395_p0 = scmp.ge.s32.totalorder %s457_s14, 1  ;;  %s457_s14 = sphi %s485_s14, %s13_s14   ;;  %s453_s13 = sphi %s483_s13, %s525_s13   ;;  %s449_s12 = sphi %s481_s12, %s524_s12  }
   0x3   : > { %p27_p1 = scmp.ge.s32.totalorder %s25_s15, 2  ;;  %p158_p2 = scmp.lt.s32.totalorder %s457_s14, 3 }
   0x5   : > { %s527_s15 = smov (%p27_p1, %s25_s15), 0  ;;  %p159_p3 = pnand %p395_p0, %p158_p2 }
   0x6   : > { %p191_p4 = scmp.lt.s32.totalorder (!%p159_p3), %s449_s12, 1 }
   0x7   : > { %162 = sbr.rel (%p159_p3) target bundleno = 220 (0xdc), region = 32 }
   0xc   : > { %v459_v0 = vmov 0.0   ;;  %v460_v1 = vmov 0   ;;  %v212_v2 = vld [vmem:[%s521_s1] sm:$0xff]  ;;  %s529_s12 = smov (!%p191_p4, %s449_s12), 1  ;;  %vm224_vm0 = vcmask 1043456   ;;  %vm220_vm1 = vcmask 31744  }
   0xd   : > { %293 = vmatprep.mubr.f32.mxu0 %v459_v0  ;;  %433 = vset.pattern.permute.xlu0 %v460_v1  ;;  %s405_s18 = sshll.u32 %s529_s12, 3  ;;  %v210_v5 = vld [vmem:[%s520_s0] sm:$0xff]  ;;  %s406_s24 = sshll.u32 %s529_s12, 4 }
   0xe   : > { %215 = vperm.xlu0 %433, %v212_v2   ;;  %s198_s21 = scalar_lea.vmem %s522_s2, %s405_s18  ;;  %s208_s27 = scalar_lea.vmem %s523_s3, %s406_s24 }
   0xf   : > { %v211_v3 = vld [vmem:[%s198_s21] sm:$0xff] }
  0x10   : > { %v219_v4 = vcombine.high %v211_v3, %v211_v3 }
  0x12   : > { %400 = vmatprep.subr.msk.mxu0 %vm224_vm0, %v219_v4 }
  0x13   : > { %401 = vmatpush1.msk.msra.mxu0 %vm224_vm0, %v211_v3 }
  0x14   : > { %402 = vmatmul.mubr.msk.f32.vlgmr.msra.gmra.mxu0 %vm220_vm1, %v210_v5 }
  0x89   : > { %v216_v6 = vpop.permute.xlu0 %215 }
  0xd4   : > { %v295_v7 = vpop.f32.mrf.mxu0 }
  0xd5   : > { %v296_v8 = vadd.f32 %v295_v7, %v216_v6 }
  0xd6   : > { %v297_v9 = vpop.f32.mrf.mxu0 }
  0xd7   : > { %v300_v10 = vmax.f32 %v296_v8, 0.0  ;;  %v298_v11 = vadd.f32 %v297_v9, %v216_v6 }
  0xd9   : > { %302 = vst [vmem:[%s208_s27] sm:$0xff] %v300_v10  ;;  %v301_v12 = vmax.f32 %v298_v11, 0.0 }
  0xdb   : > { %303 = vst [vmem:[%s208_s27 + $0x8] sm:$0xff] %v301_v12 }
  0xdc PF: > { %s13_s14 = sadd.s32 1, %s457_s14   ;;  %s524_s12 = smov %s453_s13 }
  0xdd   : > { %p10_p5 = scmp.ge.s32.totalorder %s13_s14, 4   ;;  %s525_s13 = smov %s527_s15 }
  0xdf   :  { %12 = sbr.rel (!%p10_p5) target bundleno = 2 (0x2), region = 62 }

</bundles_post_ra>
